<compile_context>
chip_gen: v7x
topology: tpu7x:2x2x1
jax: 0.10.0
libtpu: 0.0.40
codegen_flags: <defaults>
</compile_context>

<pallas_src>
import functools

import jax
import jax.numpy as jnp
from jax.experimental import pallas as pl
from jax.experimental.pallas import tpu as pltpu


def _round_up(a, m):
    return (a + m - 1) // m * m


def _cdiv(a, b):
    return (a + b - 1) // b


def task_expert_kernel(x_ref, w_ref, out_ref, acc_ref, *, use_mxu):
    """Accumulate partial sums  sum_{s,h} x[b,s,h] * w[h]  into (TB, 1)."""
    k = pl.program_id(2)

    @pl.when(k == 0)
    def _init():
        acc_ref[...] = jnp.zeros_like(acc_ref)

    x = x_ref[...]                                            # (TB, TS, Hp)
    tb, ts, hp = x.shape
    if use_mxu:
        # bf16 / fp8: contract H on the MXU with f32 accumulation, then a cheap
        # sublane sum over the S tile.  No VPU upcast/multiply on the hot data.
        p = jnp.dot(x.reshape(tb * ts, hp), w_ref[...],
                    preferred_element_type=jnp.float32)       # (TB*TS, 1)
        acc_ref[...] += jnp.sum(p.reshape(tb, ts, 1), axis=1)  # (TB, 1)
    else:
        # f32: sum over S first (cheap sublane adds), then one cross-lane (XLU)
        # reduce per batch row — ~1 add/element in the hot loop.
        partial = jnp.sum(x.astype(jnp.float32), axis=1)      # (TB, Hp)
        acc_ref[...] += jnp.sum(partial * w_ref[...].astype(jnp.float32),
                                axis=1, keepdims=True)        # (TB, 1)

    @pl.when(k == pl.num_programs(2) - 1)
    def _write():
        out_ref[...] = acc_ref[...]


def _pick_tiles(B, S2, H2, x_dtype, tb, ts, x_buffer_bytes):
    itemsize = jnp.dtype(x_dtype).itemsize
    # Sublane multiple is dtype-aware: 8 for f32, 16 for bf16, 32 for int8/fp8.
    sub = max(8, 32 // itemsize)
    if tb is None:
        tb = B if B <= 8 else 8
    assert tb % 8 == 0 or tb == B, f"tb={tb} must be a multiple of 8 or equal B={B}"
    # VMEM blocks are lane-padded to 128: account for it when sizing the tile.
    h_lane = _round_up(H2, 128)
    if ts is None:
        rows = x_buffer_bytes // max(1, tb * h_lane * itemsize)
        ts = max(sub, (rows // sub) * sub)
        ts = min(ts, _round_up(S2, sub))
    assert ts % sub == 0, f"ts={ts} must be a multiple of {sub} for dtype {x_dtype}"
    return tb, ts


def task_expert_forward(x, w, b, *, tb=None, ts=None, s_split=None,
                        use_mxu=None,
                        x_buffer_bytes=8 << 20,
                        vmem_limit_bytes=32 << 20):
    """Mean-pool over S, linear head to one logit, sigmoid + binary judgement.

    x: (B, S, H) token embeddings (f32 or bf16).
    w: linear-head weight with H elements; b: bias with a single element.
    Returns (prob, judge), each (B, 1) float32.

    Per-generation tuning notes:
      v5e: defaults are fine (an 8 MiB buffer already streams ~10 us; keep
           vmem_limit_bytes explicit since the scoped default is only 16 MiB).
      v6e: for very large S*H raise x_buffer_bytes to ~16-24 MiB and
           vmem_limit_bytes to 64-96 MiB.
      v7x: keep total resident VMEM <= ~48 MiB (64 MiB physical); prefer
           growing ts toward ~12-16 MiB/buffer rather than deeper buffering.
           bf16 inputs take the MXU path automatically.
    """
    B, S, H = x.shape
    x_dtype = x.dtype
    if use_mxu is None:
        use_mxu = jnp.dtype(x_dtype) != jnp.float32

    w_vec = jnp.asarray(w, jnp.float32).reshape(-1)
    assert w_vec.shape[0] == H, "weight must have H elements"
    b_scalar = jnp.asarray(b, jnp.float32).reshape(-1)[0]

    # --- lane folding for small H: (B, S, H) -> (B, S/g, g*H), lane-dense ----
    g = max(1, 128 // H) if H < 128 else 1
    if g > 1:
        s_fold = _round_up(S, g)
        if s_fold != S:
            x = jnp.pad(x, ((0, 0), (0, s_fold - S), (0, 0)))
        x = x.reshape(B, s_fold // g, g * H)
        w_vec = jnp.tile(w_vec, g)
    S2, H2 = x.shape[1], x.shape[2]

    tb, ts = _pick_tiles(B, S2, H2, x_dtype, tb, ts, x_buffer_bytes)

    nb = _cdiv(B, tb)
    n_s_tiles = _cdiv(S2, ts)
    if s_split is None:
        # Megacore coverage (v7x has 2 TCs): with a single batch tile, split
        # the S reduction into two parallel partial accumulators.
        s_split = 2 if (nb == 1 and n_s_tiles >= 2) else 1
    nk = _cdiv(n_s_tiles, s_split)

    Bp = nb * tb
    Sp = s_split * nk * ts
    if (Bp, Sp) != (B, S2):
        # Zero padding is exact: padded positions add 0 to the x.w sum and the
        # mean divides by the true S below.
        x = jnp.pad(x, ((0, Bp - B), (0, Sp - S2), (0, 0)))

    if use_mxu:
        w_arg = w_vec.astype(x_dtype).reshape(H2, 1)           # MXU column
        w_spec = pl.BlockSpec((H2, 1), lambda c, i, k: (0, 0))
    else:
        w_arg = w_vec.reshape(1, H2)                           # lane-dense row
        w_spec = pl.BlockSpec((1, H2), lambda c, i, k: (0, 0))

    kernel = functools.partial(task_expert_kernel, use_mxu=use_mxu)

    partial_sums = pl.pallas_call(
        kernel,
        out_shape=jax.ShapeDtypeStruct((s_split, Bp, 1), jnp.float32),
        grid_spec=pltpu.PrefetchScalarGridSpec(
            num_scalar_prefetch=0,
            grid=(s_split, nb, nk),
            in_specs=[
                # x: streamed (TB, TS, H2) tiles; the S reduction axis is last.
                pl.BlockSpec((tb, ts, H2),
                             lambda c, i, k, _nk=nk: (i, c * _nk + k, 0)),
                # w: resident (constant index_map -> fetched once).
                w_spec,
            ],
            # Per-(split, batch-tile) partial sums; squeezed leading dim.
            out_specs=pl.BlockSpec((None, tb, 1), lambda c, i, k: (c, i, 0)),
            scratch_shapes=[pltpu.VMEM((tb, 1), jnp.float32)],
        ),
        compiler_params=pltpu.CompilerParams(
            dimension_semantics=("parallel", "parallel", "arbitrary"),
            vmem_limit_bytes=vmem_limit_bytes,
        ),
    )(x, w_arg)

    sums = jnp.sum(partial_sums, axis=0)[:B]                   # (B, 1)
    logit = sums * (1.0 / float(S)) + b_scalar
    prob = jax.nn.sigmoid(logit)
    judge = (logit > 0.0).astype(jnp.float32)   # == sigmoid(logit) > 0.5
    return prob, judge


if __name__ == "__main__":
    key = jax.random.PRNGKey(0)
    kx, kw, kb, kx2 = jax.random.split(key, 4)

    def reference(x, w_vec, b):
        pooled = jnp.mean(x.astype(jnp.float32), axis=1)                # (B, H)
        logit = pooled @ jnp.asarray(w_vec, jnp.float32).reshape(-1, 1)
        logit = logit + jnp.asarray(b, jnp.float32).reshape(-1)[0]
        return jax.nn.sigmoid(logit), (logit > 0.0).astype(jnp.float32)

    # Case 1: f32 (VPU) path — lane folding (H=32 -> 128 lanes), 2 batch tiles,
    # 3-step S accumulation with tail zero padding (S'=20 padded to 24, ts=8).
    B, S, H = 16, 80, 32
    x = jax.random.normal(kx, (B, S, H), dtype=jnp.float32)
    w = jax.random.normal(kw, (H, 1), dtype=jnp.float32) * 0.1
    b = jax.random.normal(kb, (1, 1), dtype=jnp.float32) * 0.1

    prob, judge = task_expert_forward(x, w, b, tb=8, ts=8)
    jax.block_until_ready((prob, judge))
    prob_ref, judge_ref = reference(x, w, b)
    assert prob.shape == (B, 1) and judge.shape == (B, 1)
    assert jnp.allclose(prob, prob_ref, atol=1e-5), "f32 prob mismatch"
    assert jnp.array_equal(judge, judge_ref), "f32 judgement mismatch"

    # Case 2: bf16 (MXU) path — single batch tile, S reduction split across a
    # size-2 parallel axis (megacore coverage on v7x), dtype-aware ts=16.
    B2, S2, H2 = 4, 128, 32
    x2 = jax.random.normal(kx2, (B2, S2, H2), dtype=jnp.float32).astype(jnp.bfloat16)
    prob2, judge2 = task_expert_forward(x2, w, b, ts=16)
    jax.block_until_ready((prob2, judge2))
    w_bf16 = jnp.asarray(w, jnp.float32).astype(jnp.bfloat16)
    prob2_ref, judge2_ref = reference(x2, w_bf16, b)
    assert prob2.shape == (B2, 1) and judge2.shape == (B2, 1)
    assert jnp.allclose(prob2, prob2_ref, atol=1e-3), "bf16 prob mismatch"
    assert jnp.array_equal(judge2, judge2_ref), "bf16 judgement mismatch"

    print("KERNEL_OK")
</pallas_src>

<mosaic_0001>
module attributes {stable_mosaic.version = 11 : i64} {
  func.func @task_expert_kernel(%arg0: i32, %arg1: i32, %arg2: i32, %arg3: memref<8x8x128xf32, #tpu.memory_space<vmem>>, %arg4: memref<1x128xf32, #tpu.memory_space<vmem>>, %arg5: memref<1x8x1xf32, #tpu.memory_space<vmem>>, %arg6: memref<8x1xf32, #tpu.memory_space<vmem>>) attributes {dimension_semantics = [#tpu.dimension_semantics<parallel>, #tpu.dimension_semantics<parallel>, #tpu.dimension_semantics<arbitrary>], iteration_bounds = array<i64: 1, 2, 3>, scalar_prefetch = 0 : i64, scratch_operands = 1 : i64, tpu.core_type = #tpu.core_type<tc>, window_params = [{transform_indices = @transform_0, window_bounds = array<i64: 8, 8, 128>}, {pipeline_mode = #tpu.pipeline_mode<synchronous>, transform_indices = @transform_1, window_bounds = array<i64: 1, 128>}, {transform_indices = @transform_2, window_bounds = array<i64: 1, 8, 1>}]} {
    %c0_i32 = arith.constant 0 : i32
    %0 = arith.cmpi eq, %arg2, %c0_i32 : i32
    %1 = arith.extui %0 : i1 to i32
    %c0_i32_0 = arith.constant 0 : i32
    %2 = arith.cmpi ne, %1, %c0_i32_0 : i32
    scf.if %2 {
      %cst_11 = arith.constant 0.000000e+00 : f32
      %16 = vector.broadcast %cst_11 : f32 to vector<8x1xf32>
      %c0_12 = arith.constant 0 : index
      %c0_13 = arith.constant 0 : index
      %17 = vector.load %arg6[%c0_12, %c0_13] : memref<8x1xf32, #tpu.memory_space<vmem>>, vector<8x1xf32>
      tpu.vector_store %arg6[%c0_12, %c0_13], %16 {strides = array<i32>} : memref<8x1xf32, #tpu.memory_space<vmem>>, vector<8x1xf32>,
    } else {
    }
    %c0 = arith.constant 0 : index
    %c0_1 = arith.constant 0 : index
    %c0_2 = arith.constant 0 : index
    %3 = vector.load %arg3[%c0, %c0_1, %c0_2] : memref<8x8x128xf32, #tpu.memory_space<vmem>>, vector<8x8x128xf32>
    %cst = arith.constant dense<0.000000e+00> : vector<8x128xf32>
    %4 = vector.multi_reduction <add>, %3, %cst [1] : vector<8x8x128xf32> to vector<8x128xf32>
    %c0_3 = arith.constant 0 : index
    %c0_4 = arith.constant 0 : index
    %5 = vector.load %arg6[%c0_3, %c0_4] : memref<8x1xf32, #tpu.memory_space<vmem>>, vector<8x1xf32>
    %c0_5 = arith.constant 0 : index
    %c0_6 = arith.constant 0 : index
    %6 = vector.load %arg4[%c0_5, %c0_6] : memref<1x128xf32, #tpu.memory_space<vmem>>, vector<1x128xf32>
    %7 = vector.broadcast %6 : vector<1x128xf32> to vector<8x128xf32>
    %8 = arith.mulf %4, %7 : vector<8x128xf32>
    %cst_7 = arith.constant dense<0.000000e+00> : vector<8xf32>
    %9 = vector.multi_reduction <add>, %8, %cst_7 [1] : vector<8x128xf32> to vector<8xf32>
    %10 = vector.shape_cast %9 : vector<8xf32> to vector<8x1xf32>
    %11 = arith.addf %5, %10 : vector<8x1xf32>
    %c0_8 = arith.constant 0 : index
    %c0_9 = arith.constant 0 : index
    %12 = vector.load %arg6[%c0_8, %c0_9] : memref<8x1xf32, #tpu.memory_space<vmem>>, vector<8x1xf32>
    tpu.vector_store %arg6[%c0_8, %c0_9], %11 {strides = array<i32>} : memref<8x1xf32, #tpu.memory_space<vmem>>, vector<8x1xf32>,
    %c2_i32 = arith.constant 2 : i32
    %13 = arith.cmpi eq, %arg2, %c2_i32 : i32
    %14 = arith.extui %13 : i1 to i32
    %c0_i32_10 = arith.constant 0 : i32
    %15 = arith.cmpi ne, %14, %c0_i32_10 : i32
    scf.if %15 {
      %c0_11 = arith.constant 0 : index
      %c0_12 = arith.constant 0 : index
      %16 = vector.load %arg6[%c0_11, %c0_12] : memref<8x1xf32, #tpu.memory_space<vmem>>, vector<8x1xf32>
      %c0_13 = arith.constant 0 : index
      %c0_14 = arith.constant 0 : index
      %c0_15 = arith.constant 0 : index
      %17 = vector.load %arg5[%c0_13, %c0_14, %c0_15] : memref<1x8x1xf32, #tpu.memory_space<vmem>>, vector<1x8x1xf32>
      %18 = vector.shape_cast %17 : vector<1x8x1xf32> to vector<8x1xf32>
      %19 = vector.shape_cast %16 : vector<8x1xf32> to vector<1x8x1xf32>
      tpu.vector_store %arg5[%c0_13, %c0_14, %c0_15], %19 {strides = array<i32>} : memref<1x8x1xf32, #tpu.memory_space<vmem>>, vector<1x8x1xf32>,
    } else {
    }
    return
  }
  func.func @transform_0(%arg0: i32, %arg1: i32, %arg2: i32) -> (i32, i32, i32) {
    %c3_i32 = arith.constant 3 : i32
    %0 = arith.muli %arg0, %c3_i32 : i32
    %1 = arith.addi %0, %arg2 : i32
    %c0_i32 = arith.constant 0 : i32
    %c0_i32_0 = arith.constant 0 : i32
    return %arg1, %1, %c0_i32 : i32, i32, i32
  }
  func.func @transform_1(%arg0: i32, %arg1: i32, %arg2: i32) -> (i32, i32) {
    %c0_i32 = arith.constant 0 : i32
    %c0_i32_0 = arith.constant 0 : i32
    %c0_i32_1 = arith.constant 0 : i32
    return %c0_i32, %c0_i32_0 : i32, i32
  }
  func.func @transform_2(%arg0: i32, %arg1: i32, %arg2: i32) -> (i32, i32, i32) {
    %c0_i32 = arith.constant 0 : i32
    %c0_i32_0 = arith.constant 0 : i32
    return %arg0, %arg1, %c0_i32 : i32, i32, i32
  }
}

</mosaic_0001>

<bundles_post_ra>
// kernel: tpu_custom_call.1
= control target key start
LH: loop header
LB: loop body
LE: loop exit
PB: predicated region body
PF: predicated region fallthrough
CT: control target
= control target key end

     0   :  { %7 = vsyncpa [#allocation4], 0  ;;  %s792_s0 = inlined_call_operand.hbm [shape: f32[16,24,128], index: 0, kind: input, shape index: {}]   ;;  %s793_s1 = inlined_call_operand.vmem [shape: f32[1,128], index: 1, kind: input, shape index: {}]   ;;  %s794_s2 = inlined_call_operand.vmem [shape: f32[1,16,1], index: 2, kind: output, shape index: {}]  }
   0x1   :  { %9 = vsyncpa [#allocation4 + $0x1], 0  ;;  %s632_s9 = smov 0   ;;  %s634_s10 = smov 0  }
   0x2   :  { %s636_s11 = smov 0   ;;  %s638_s12 = smov 0  }
   0x3   :  { %s640_s13 = smov 0   ;;  %s642_s14 = smov 0  }
   0x4   :  { %s644_s15 = smov 0   ;;  %s646_s16 = smov 0  }
   0x5 LB: > { %s422_s17 = sadd.s32 4294967295, %s610_s16   ;;  %s27_s18 = sadd.s32 1, %s602_s14  ;;  %s610_s16 = sphi %s646_s16, %s15_s16   ;;  %s606_s15 = sphi %s644_s15, %s805_s15   ;;  %s602_s14 = sphi %s642_s14, %s804_s14   ;;  %s598_s13 = sphi %s640_s13, %s803_s13   ;;  %s594_s12 = sphi %s638_s12, %s802_s12   ;;  %s590_s11 = sphi %s636_s11, %s801_s11   ;;  %s586_s10 = sphi %s634_s10, %s800_s10   ;;  %s582_s9 = sphi %s632_s9, %s799_s9  }
   0x6   : > { %p28_p0 = scmp.ge.s32.totalorder %s27_s18, 3  ;;  %s30_s19 = sadd.s32 1, %s606_s15 }
   0x7   : > { %s47_s20 = sadd.s32 1, %s590_s11  ;;  %p54_p1 = scmp.ne.s32.totalorder %s590_s11, %s586_s10 }
   0x8   : > { %s807_s18 = smov (%p28_p0, %s27_s18), 0  ;;  %s809_s19 = smov (!%p28_p0, %s30_s19), %s606_s15 }
   0x9   : > { %s43_s21 = ssub.s32 %s602_s14, %s807_s18  ;;  %p55_p2 = scmp.eq.s32.totalorder %s610_s16, 0 }
   0xa   : > { %p32_p3 = scmp.ge.s32.totalorder %s809_s19, 2  ;;  %p60_p4 = scmp.ne.s32.totalorder %s586_s10, %s582_s9 }
   0xb   : > { %p683_p5 = por %p55_p2, %p54_p1  ;;  %p61_p6 = scmp.eq.s32.totalorder %s422_s17, 0 }
   0xc   : > { %s811_s19 = smov (%p32_p3, %s809_s19), 0  ;;  %p445_p8 = scmp.lt.s32.totalorder %s610_s16, 6 }
   0xd   : > { %p689_p7 = por %p61_p6, %p60_p4  ;;  %s42_s24 = ssub.s32 %s606_s15, %s811_s19 }
   0xe   : > { %s44_s25 = sor.u32 %s43_s21, %s42_s24  ;;  %s136_s26 = sand.u32 1, %s590_s11  }
   0xf   : > { %p45_p9 = scmp.eq.s32.totalorder %s44_s25, 0  ;;  %s426_s27 = sshll.u32 %s136_s26, 6 }
  0x10   : > { %s438_s28 = smul.u32 24, %s606_s15  ;;  %s140_s4 = scalar_lea.vmem [#allocation3], %s426_s27 }
  0x11   : > { %s699_s29 = scalar_select %p45_p9, %s590_s11, %s47_s20  }
  0x12   : > { %s148_s30 = sadd.s32 %s602_s14, %s438_s28  ;;  %s151_s5 = sshll.u32 %s140_s4, 4  ;;  %s707_s5 = int_to_ptr.vmem [resolvable:$true] %s151_s5 }
  0x13   : > { %s429_s3 = sshll.u32 %s148_s30, 7  ;;  %p713_p10 = pnand %p445_p8, %p683_p5 }
  0x14   : > { %s705_s8 = scalar_lea.hbm %s792_s0, %s429_s3  ;;  %s718_s17 = scalar_lea.sflag [#allocation4], %s136_s26 }
  0x15   : > { %s514_s20 = scalar_lea.hbm %s705_s8, 1024  ;;  %p516_p13 = pneg %p713_p10 }
  0x16   : > { %p515_p12 = scmp.ne.s32.totalorder %s705_s8, %s514_s20  ;;  %s519_s24 = scalar_lea.hbm %s792_s0, 6144 }
  0x17   : > { %p520_p2 = scmp.lt.u32.totalorder %s705_s8, %s792_s0  ;;  %p521_p3 = scmp.lt.u32.totalorder %s519_s24, %s514_s20 }
  0x18   : > { %p517_p0 = pnand %p516_p13, %p515_p12  ;;  %p523_p5 = scmp.lt.u32.totalorder %s514_s20, %s705_s8 }
  0x19   : > { %p522_p4 = por %p521_p3, %p520_p2 }
  0x1a   : > { %p518_p1 = pneg %p517_p0 }
  0x1b   : > { %p524_p6 = por %p523_p5, %p522_p4 }
  0x1d   : > { %p525_p8 = pnand %p524_p6, %p518_p1 }
  0x1f   : > { %528 = shalt.err (!%p525_p8)
}
  0x20   : > { %s529_s26 = scalar_lea.vmem %s707_s5, 1024  ;;  %s612_s28 = smov [#allocation3]  }
  0x21   : > { %p530_p9 = scmp.ne.s32.totalorder %s707_s5, %s529_s26  ;;  %s534_s30 = sshll.u32 %s612_s28, 4  ;;  %s535_s30 = int_to_ptr.vmem [resolvable:$false] %s534_s30 }
  0x22   : > { %s536_s3 = scalar_lea.vmem %s535_s30, 2048  ;;  %p537_p11 = scmp.lt.s32.totalorder %s707_s5, %s535_s30 }
  0x23   : > { %p532_p12 = pnand %p530_p9, %p516_p13  ;;  %p538_p2 = scmp.lt.s32.totalorder %s536_s3, %s529_s26 }
  0x25   : > { %p533_p0 = pneg %p532_p12  ;;  %p539_p3 = por %p538_p2, %p537_p11 }
  0x27   : > { %p540_p4 = pnand %p539_p3, %p533_p0 }
  0x29   : > { %543 = shalt.err (!%p540_p4)
}
  0x2a   : > { %s613_s4 = smov 384   ;;  %s614_s6 = smov 128  }
  0x2b   : > { %s615_s7 = smov 8   ;;  %p159_p13 = scmp.lt.s32.totalorder %s610_s16, 7 }
  0x2c   : > { %444 = dma.hbm_to_vmem [thread:$0]  (!%p713_p10), %s705_s8, 1024, %s707_s5, %s718_s17, %s613_s4, %s614_s6, %s615_s7  }
  0x2d   : > { %p798_p1 = scmp.ge.s32.totalorder %s610_s16, 1 }
  0x2f   : > { %p160_p5 = pnand %p798_p1, %p159_p13 }
  0x30   : > { %s165_s20 = sand.u32 (!%p160_p5), 1, %s586_s10  }
  0x31   : > { %163 = sbr.rel (%p160_p5) target bundleno = 243 (0xf3), region = 28  ;;  %s431_s21 = sshll.u32 (!%p160_p5), %s165_s20, 6 }
  0x32   : > { %s166_s22 = scalar_lea.sflag (!%p160_p5), [#allocation4], %s165_s20  ;;  %s169_s24 = scalar_lea.vmem (!%p160_p5), [#allocation3], %s431_s21 }
  0x38   : > { %577 = dma.done.wait (%p689_p7), %s166_s22, 1024  }
  0x39   : > { %579 = vsyncadd (%p689_p7), %s166_s22, 4294966272  ;;  %p198_p11 = scmp.lt.s32.totalorder %s598_s13, 1  ;;  %p433_p10 = scmp.ne.s32.totalorder %s594_s12, 0 }
  0x3a   : > { %vm208_vm0 = vcmask (!%p433_p10), 7168   ;;  %v616_v0 = vmov (!%p433_p10), 0.0  }
  0x3b   : > { %s813_s13 = smov (!%p198_p11, %s598_s13), 1  ;;  %207 = sbr.rel (%p433_p10) target bundleno = 66 (0x42), region = 36 }
  0x3c   : > { %s432_s5 = sshll.u32 %s813_s13, 3  ;;  %209 = vst.msk [vmem:[#allocation2] sm:$0xff] (!%p433_p10), %vm208_vm0, %v616_v0 }
  0x3d   : > { %s759_s17 = scalar_lea.vmem %s794_s2, %s432_s5 }
  0x42 PF: > { %v210_v1 = vld [vmem:[%s169_s24] sm:$0xff]  ;;  %v211_v2 = vld [vmem:[%s169_s24 + $0x8] sm:$0xff]  ;;  %v212_v3 = vld [vmem:[%s169_s24 + $0x10] sm:$0xff]  ;;  %vm291_vm1 = vcmask 1041409   ;;  %vm294_vm2 = vcmask 1042434   ;;  %vm297_vm3 = vcmask 1043459  }
  0x43   : > { %v213_v4 = vld [vmem:[%s169_s24 + $0x18] sm:$0xff]  ;;  %v214_v5 = vld [vmem:[%s169_s24 + $0x20] sm:$0xff]  ;;  %v215_v6 = vld [vmem:[%s169_s24 + $0x28] sm:$0xff]  ;;  %v218_v7 = vrot.slane %v210_v1, 4  ;;  %v224_v8 = vrot.slane %v211_v2, 4  ;;  %v230_v9 = vrot.slane %v212_v3, 4 }
  0x44   : > { %v216_v10 = vld [vmem:[%s169_s24 + $0x30] sm:$0xff]  ;;  %v217_v11 = vld [vmem:[%s169_s24 + $0x38] sm:$0xff]  ;;  %v236_v12 = vrot.slane %v213_v4, 4  ;;  %v242_v13 = vrot.slane %v214_v5, 4  ;;  %v248_v14 = vrot.slane %v215_v6, 4  ;;  %vm300_vm4 = vcmask 1044484  }
  0x45   : > { %v219_v15 = vadd.f32 %v218_v7, %v210_v1  ;;  %v225_v16 = vadd.f32 %v224_v8, %v211_v2  ;;  %v231_v17 = vadd.f32 %v230_v9, %v212_v3  ;;  %v254_v18 = vrot.slane %v216_v10, 4  ;;  %v434_v47 = vld [vmem:[%s793_s1] ss:$0 sm:$0xff]  ;;  %p435_p7 = scmp.ne.s32.totalorder %s594_s12, 2 }
  0x46   : > { %v237_v19 = vadd.f32 %v236_v12, %v213_v4  ;;  %v243_v20 = vadd.f32 %v242_v13, %v214_v5  ;;  %v249_v21 = vadd.f32 %v248_v14, %v215_v6  ;;  %v260_v22 = vrot.slane %v217_v11, 4 }
  0x47   : > { %v220_v23 = vrot.slane %v219_v15, 2  ;;  %v226_v24 = vrot.slane %v225_v16, 2  ;;  %v232_v25 = vrot.slane %v231_v17, 2  ;;  %v255_v26 = vadd.f32 %v254_v18, %v216_v10 }
  0x48   : > { %v238_v27 = vrot.slane %v237_v19, 2  ;;  %v244_v28 = vrot.slane %v243_v20, 2  ;;  %v250_v29 = vrot.slane %v249_v21, 2  ;;  %v261_v30 = vadd.f32 %v260_v22, %v217_v11 }
  0x49   : > { %v221_v31 = vadd.f32 %v220_v23, %v219_v15  ;;  %v227_v32 = vadd.f32 %v226_v24, %v225_v16  ;;  %v233_v33 = vadd.f32 %v232_v25, %v231_v17  ;;  %v256_v34 = vrot.slane %v255_v26, 2  ;;  %v266_v16 = vld [vmem:[#allocation2] sm:$0xff] }
  0x4a   : > { %v239_v35 = vadd.f32 %v238_v27, %v237_v19  ;;  %v245_v36 = vadd.f32 %v244_v28, %v243_v20  ;;  %v251_v37 = vadd.f32 %v250_v29, %v249_v21  ;;  %v262_v38 = vrot.slane %v261_v30, 2 }
  0x4b   : > { %v222_v39 = vrot.slane %v221_v31, 1  ;;  %v228_v40 = vrot.slane %v227_v32, 1  ;;  %v234_v41 = vrot.slane %v233_v33, 1  ;;  %v257_v42 = vadd.f32 %v256_v34, %v255_v26 }
  0x4c   : > { %v240_v43 = vrot.slane %v239_v35, 1  ;;  %v246_v44 = vrot.slane %v245_v36, 1  ;;  %v252_v45 = vrot.slane %v251_v37, 1  ;;  %v263_v46 = vadd.f32 %v262_v38, %v261_v30 }
  0x4d   : > { %v223_v48 = vadd.f32 %v222_v39, %v221_v31  ;;  %v229_v49 = vadd.f32 %v228_v40, %v227_v32  ;;  %v235_v50 = vadd.f32 %v234_v41, %v233_v33  ;;  %v258_v51 = vrot.slane %v257_v42, 1 }
  0x4e   : > { %v241_v52 = vadd.f32 %v240_v43, %v239_v35  ;;  %v247_v53 = vadd.f32 %v246_v44, %v245_v36  ;;  %v253_v54 = vadd.f32 %v252_v45, %v251_v37  ;;  %v264_v55 = vrot.slane %v263_v46, 1 }
  0x4f   : > { %v259_v56 = vadd.f32 %v258_v51, %v257_v42  ;;  %v274_v57 = vmul.f32 %v434_v47, %v223_v48  ;;  %v275_v58 = vmul.f32 %v434_v47, %v229_v49  ;;  %v276_v59 = vmul.f32 %v434_v47, %v235_v50 }
  0x50   : > { %v265_v60 = vadd.f32 %v264_v55, %v263_v46  ;;  %v277_v61 = vmul.f32 %v434_v47, %v241_v52  ;;  %v278_v62 = vmul.f32 %v434_v47, %v247_v53  ;;  %v279_v63 = vmul.f32 %v434_v47, %v253_v54 }
  0x51   : > { %v280_v0 = vmul.f32 %v434_v47, %v259_v56  ;;  %v290_v1 = vrot.slane %v275_v58, 7  ;;  %v293_v2 = vrot.slane %v276_v59, 6  ;;  %vm303_vm5 = vcmask 1045509  }
  0x52   : > { %v281_v3 = vmul.f32 %v434_v47, %v265_v60  ;;  %v296_v4 = vrot.slane %v277_v61, 5  ;;  %v299_v5 = vrot.slane %v278_v62, 4  ;;  %v302_v7 = vrot.slane %v279_v63, 3 }
  0x53   : > { %v292_v6 = vsel %vm291_vm1, %v290_v1, %v274_v57  ;;  %v305_v9 = vrot.slane %v280_v0, 2  ;;  %vm306_vm6 = vcmask 1046534   ;;  %vm309_vm7 = vcmask 1047559  }
  0x54   : > { %v295_v8 = vsel %vm294_vm2, %v293_v2, %v292_v6  ;;  %v308_v11 = vrot.slane %v281_v3, 1  ;;  %vm315_vm8 = vcmask 7168  }
  0x55   : > { %v298_v10 = vsel %vm297_vm3, %v296_v4, %v295_v8 }
  0x56   : > { %v301_v12 = vsel %vm300_vm4, %v299_v5, %v298_v10 }
  0x57   : > { %v304_v13 = vsel %vm303_vm5, %v302_v7, %v301_v12 }
  0x58   : > { %v307_v14 = vsel %vm306_vm6, %v305_v9, %v304_v13 }
  0x59   : > { %v310_v15 = vsel %vm309_vm7, %v308_v11, %v307_v14 }
  0x5a   : > { %312 = vadd.xlane.f32.xlu0 %v310_v15 }
  0xe4   : > { %320 = sbr.rel (%p435_p7) target bundleno = 243 (0xf3), region = 40 }
  0xe7   : > { %v313_v17 = vpop.xlane.xlu0 %312 }
  0xe8   : > { %v314_v18 = vadd.f32 %v313_v17, %v266_v16 }
  0xea   : > { %316 = vst.msk [vmem:[#allocation2] sm:$0xff] %vm315_vm8, %v314_v18 }
  0xf1   : > { %v321_v19 = vld [vmem:[#allocation2] sm:$0xff] }
  0xf2   : > { %322 = vst.msk [vmem:[%s759_s17] sm:$0xff] %vm315_vm8, %v321_v19 }
  0xf3 PF: > { %s15_s16 = sadd.s32 1, %s610_s16   ;;  %s799_s9 = smov %s586_s10 }
  0xf4   : > { %p12_p6 = scmp.ge.s32.totalorder %s15_s16, 8   ;;  %s800_s10 = smov %s590_s11 }
  0xf5   : > { %s801_s11 = smov %s699_s29  ;;  %s802_s12 = smov %s602_s14 }
  0xf6   : > { %s803_s13 = smov %s606_s15  ;;  %s804_s14 = smov %s807_s18 }
  0xf7   : > { %s805_s15 = smov %s811_s19  ;;  %14 = sbr.rel (!%p12_p6) target bundleno = 5 (0x5), region = 76 }
  0xfe   :  { %350 = vsyncpa [#allocation4], 1 }
  0xff   :  { %352 = vsyncpa [#allocation4 + $0x1], 1 }

</bundles_post_ra>
